<compile_context>
chip_gen: v7x
topology: tpu7x:2x2x1
jax: 0.10.0
libtpu: 0.0.40
codegen_flags: <defaults>
</compile_context>

<pallas_src>
import jax
import jax.numpy as jnp
from jax.experimental import pallas as pl
from jax.experimental.pallas import tpu as pltpu  # noqa: F401 (TPU backend)


def _relu14_kernel(x_ref, o_ref):
    # v1..v7 = x + x ; v8 = sum(v1..v7) ; relu(v8)  ==  relu(14 * x)
    x = x_ref[...]
    o_ref[...] = jnp.maximum(x * jnp.asarray(14.0, x.dtype), jnp.zeros_like(x))


def _relu14_single_block(x):
    """Run relu(14*x) as one full-array Pallas block (no grid)."""
    nd = x.ndim
    spec = pl.BlockSpec(x.shape, lambda: (0,) * nd)
    return pl.pallas_call(
        _relu14_kernel,
        out_shape=jax.ShapeDtypeStruct(x.shape, x.dtype),
        in_specs=[spec],
        out_specs=spec,
        # Same shape & dtype elementwise op -> allow in-place writeback.
        input_output_aliases={0: 0},
    )(x)


def model_forward(x1):
    """x1: float32 array of shape (N, C, H, W). Returns relu(14 * x1)."""
    orig_shape = x1.shape
    total = x1.size

    # Present the data as a lane-dense slab when a free (metadata-only)
    # reshape allows it; otherwise fall back to the full-array block, which
    # is exempt from the (8, 128) divisibility rule.  No pad, no slice.
    if total % (8 * 128) == 0:
        shaped = x1.reshape(8, total // 8)            # unmasked vld/vst streams
    elif total % 128 == 0:
        shaped = x1.reshape(total // 128, 128)
    else:
        shaped = x1                                   # full-array block

    out = _relu14_single_block(shaped)
    return out.reshape(orig_shape)


# Jit the wrapper so the reshapes stay metadata-only and XLA can fuse around
# the custom call when this op is embedded in a larger program.
model_forward_jit = jax.jit(model_forward)


if __name__ == "__main__":
    key = jax.random.PRNGKey(0)
    # Same shape as the reference module's example input (already small: 196 KiB).
    x1 = jax.random.normal(key, (1, 256, 14, 14), dtype=jnp.float32)

    out = model_forward_jit(x1)
    out = jax.block_until_ready(out)

    # Sanity check against the pure-JAX reference (relu(14*x) vs. chained adds
    # differs by at most a couple of ULPs; well within tolerance).
    ref = jnp.maximum(14.0 * x1, 0.0)
    assert out.shape == x1.shape
    assert jnp.allclose(out, ref, atol=1e-5, rtol=1e-5)

    print("KERNEL_OK")
</pallas_src>

<mosaic_0001>
module attributes {stable_mosaic.version = 11 : i64} {
  func.func @_relu14_kernel(%arg0: memref<8x6272xf32, #tpu.memory_space<vmem>>, %arg1: memref<8x6272xf32, #tpu.memory_space<vmem>>) attributes {dimension_semantics = [], scalar_prefetch = 0 : i64, scratch_operands = 0 : i64, tpu.core_type = #tpu.core_type<tc>} {
    %c0 = arith.constant 0 : index
    %c0_0 = arith.constant 0 : index
    %0 = vector.load %arg0[%c0, %c0_0] : memref<8x6272xf32, #tpu.memory_space<vmem>>, vector<8x6272xf32>
    %cst = arith.constant 1.400000e+01 : f32
    %1 = vector.broadcast %cst : f32 to vector<8x6272xf32>
    %2 = arith.mulf %0, %1 : vector<8x6272xf32>
    %cst_1 = arith.constant 0.000000e+00 : f32
    %3 = vector.broadcast %cst_1 : f32 to vector<8x6272xf32>
    %4 = arith.maximumf %2, %3 : vector<8x6272xf32>
    %c0_2 = arith.constant 0 : index
    %c0_3 = arith.constant 0 : index
    %5 = vector.load %arg1[%c0_2, %c0_3] : memref<8x6272xf32, #tpu.memory_space<vmem>>, vector<8x6272xf32>
    tpu.vector_store %arg1[%c0_2, %c0_3], %4 {strides = array<i32>} : memref<8x6272xf32, #tpu.memory_space<vmem>>, vector<8x6272xf32>,
    return
  }
}

</mosaic_0001>

<bundles_post_ra>
// kernel: model_forward.1
= control target key start
LH: loop header
LB: loop body
LE: loop exit
PB: predicated region body
PF: predicated region fallthrough
CT: control target
= control target key end

     0   :  { %s512_s0 = inlined_call_operand.vmem [shape: f32[8,6272], index: 0, kind: input, shape index: {}, may-alias: {0,1}]   ;;  %s513_s1 = inlined_call_operand.vmem [shape: f32[8,6272], index: 1, kind: output, shape index: {}, may-alias: {0,1}]  }
   0x1   :  { %v8_v0 = vld [vmem:[%s512_s0] sm:$0xff]  ;;  %v9_v1 = vld [vmem:[%s512_s0 + $0x8] sm:$0xff]  ;;  %v10_v2 = vld [vmem:[%s512_s0 + $0x10] sm:$0xff] }
   0x2   :  { %v57_v3 = vmul.f32 14.0, %v8_v0  ;;  %v58_v4 = vmul.f32 14.0, %v9_v1  ;;  %v59_v5 = vmul.f32 14.0, %v10_v2  ;;  %v11_v6 = vld [vmem:[%s512_s0 + $0x18] sm:$0xff]  ;;  %v12_v7 = vld [vmem:[%s512_s0 + $0x20] sm:$0xff]  ;;  %v13_v8 = vld [vmem:[%s512_s0 + $0x28] sm:$0xff] }
   0x3   :  { %v60_v9 = vmul.f32 14.0, %v11_v6  ;;  %v61_v10 = vmul.f32 14.0, %v12_v7  ;;  %v62_v11 = vmul.f32 14.0, %v13_v8  ;;  %v14_v12 = vld [vmem:[%s512_s0 + $0x30] sm:$0xff]  ;;  %v15_v13 = vld [vmem:[%s512_s0 + $0x38] sm:$0xff]  ;;  %v16_v14 = vld [vmem:[%s512_s0 + $0x40] sm:$0xff] }
   0x4   :  { %v106_v15 = vmax.f32 %v57_v3, 0.0  ;;  %v107_v16 = vmax.f32 %v58_v4, 0.0  ;;  %v108_v17 = vmax.f32 %v59_v5, 0.0  ;;  %v63_v18 = vmul.f32 14.0, %v14_v12  ;;  %v17_v19 = vld [vmem:[%s512_s0 + $0x48] sm:$0xff]  ;;  %v18_v20 = vld [vmem:[%s512_s0 + $0x50] sm:$0xff] }
   0x5   :  { %v109_v21 = vmax.f32 %v60_v9, 0.0  ;;  %v110_v22 = vmax.f32 %v61_v10, 0.0  ;;  %v111_v23 = vmax.f32 %v62_v11, 0.0  ;;  %v64_v24 = vmul.f32 14.0, %v15_v13  ;;  %v19_v25 = vld [vmem:[%s512_s0 + $0x58] sm:$0xff]  ;;  %v20_v26 = vld [vmem:[%s512_s0 + $0x60] sm:$0xff] }
   0x6   :  { %155 = vst [vmem:[%s513_s1] sm:$0xff] %v106_v15  ;;  %156 = vst [vmem:[%s513_s1 + $0x8] sm:$0xff] %v107_v16  ;;  %v112_v27 = vmax.f32 %v63_v18, 0.0  ;;  %v65_v28 = vmul.f32 14.0, %v16_v14  ;;  %v66_v29 = vmul.f32 14.0, %v17_v19  ;;  %v67_v30 = vmul.f32 14.0, %v18_v20 }
   0x7   :  { %157 = vst [vmem:[%s513_s1 + $0x10] sm:$0xff] %v108_v17  ;;  %v113_v33 = vmax.f32 %v64_v24, 0.0  ;;  %v68_v34 = vmul.f32 14.0, %v19_v25  ;;  %v69_v35 = vmul.f32 14.0, %v20_v26 }
   0x8   :  { %v114_v39 = vmax.f32 %v65_v28, 0.0  ;;  %v115_v40 = vmax.f32 %v66_v29, 0.0  ;;  %v116_v41 = vmax.f32 %v67_v30, 0.0 }
   0x9   :  { %v117_v45 = vmax.f32 %v68_v34, 0.0  ;;  %v118_v46 = vmax.f32 %v69_v35, 0.0 }
   0xe   :  { %v21_v31 = vld [vmem:[%s512_s0 + $0x68] sm:$0xff]  ;;  %v22_v32 = vld [vmem:[%s512_s0 + $0x70] sm:$0xff] }
   0xf   :  { %158 = vst [vmem:[%s513_s1 + $0x18] sm:$0xff] %v109_v21  ;;  %159 = vst [vmem:[%s513_s1 + $0x20] sm:$0xff] %v110_v22  ;;  %v70_v36 = vmul.f32 14.0, %v21_v31  ;;  %v71_v42 = vmul.f32 14.0, %v22_v32 }
  0x10   :  { %160 = vst [vmem:[%s513_s1 + $0x28] sm:$0xff] %v111_v23 }
  0x11   :  { %v119_v47 = vmax.f32 %v70_v36, 0.0  ;;  %v120_v51 = vmax.f32 %v71_v42, 0.0 }
  0x17   :  { %v23_v37 = vld [vmem:[%s512_s0 + $0x78] sm:$0xff]  ;;  %v24_v38 = vld [vmem:[%s512_s0 + $0x80] sm:$0xff] }
  0x18   :  { %161 = vst [vmem:[%s513_s1 + $0x30] sm:$0xff] %v112_v27  ;;  %v72_v48 = vmul.f32 14.0, %v23_v37  ;;  %v73_v52 = vmul.f32 14.0, %v24_v38 }
  0x1a   :  { %v121_v57 = vmax.f32 %v72_v48, 0.0  ;;  %v122_v63 = vmax.f32 %v73_v52, 0.0 }
  0x1f   :  { %v25_v43 = vld [vmem:[%s512_s0 + $0x88] sm:$0xff]  ;;  %v26_v44 = vld [vmem:[%s512_s0 + $0x90] sm:$0xff] }
  0x20   :  { %162 = vst [vmem:[%s513_s1 + $0x38] sm:$0xff] %v113_v33  ;;  %v74_v53 = vmul.f32 14.0, %v25_v43  ;;  %v75_v54 = vmul.f32 14.0, %v26_v44 }
  0x22   :  { %v123_v0 = vmax.f32 %v74_v53, 0.0  ;;  %v124_v1 = vmax.f32 %v75_v54, 0.0 }
  0x27   :  { %v27_v49 = vld [vmem:[%s512_s0 + $0x98] sm:$0xff]  ;;  %v28_v50 = vld [vmem:[%s512_s0 + $0xa0] sm:$0xff] }
  0x28   :  { %163 = vst [vmem:[%s513_s1 + $0x40] sm:$0xff] %v114_v39  ;;  %164 = vst [vmem:[%s513_s1 + $0x48] sm:$0xff] %v115_v40  ;;  %v76_v58 = vmul.f32 14.0, %v27_v49  ;;  %v77_v59 = vmul.f32 14.0, %v28_v50 }
  0x29   :  { %165 = vst [vmem:[%s513_s1 + $0x50] sm:$0xff] %v116_v41 }
  0x2a   :  { %v125_v5 = vmax.f32 %v76_v58, 0.0  ;;  %v126_v6 = vmax.f32 %v77_v59, 0.0 }
  0x30   :  { %v29_v55 = vld [vmem:[%s512_s0 + $0xa8] sm:$0xff]  ;;  %v30_v56 = vld [vmem:[%s512_s0 + $0xb0] sm:$0xff] }
  0x31   :  { %166 = vst [vmem:[%s513_s1 + $0x58] sm:$0xff] %v117_v45  ;;  %167 = vst [vmem:[%s513_s1 + $0x60] sm:$0xff] %v118_v46  ;;  %v78_v60 = vmul.f32 14.0, %v29_v55  ;;  %v79_v2 = vmul.f32 14.0, %v30_v56 }
  0x32   :  { %168 = vst [vmem:[%s513_s1 + $0x68] sm:$0xff] %v119_v47 }
  0x33   :  { %v127_v7 = vmax.f32 %v78_v60, 0.0  ;;  %v128_v11 = vmax.f32 %v79_v2, 0.0 }
  0x39   :  { %v31_v61 = vld [vmem:[%s512_s0 + $0xb8] sm:$0xff]  ;;  %v32_v62 = vld [vmem:[%s512_s0 + $0xc0] sm:$0xff] }
  0x3a   :  { %169 = vst [vmem:[%s513_s1 + $0x70] sm:$0xff] %v120_v51  ;;  %v80_v8 = vmul.f32 14.0, %v31_v61  ;;  %v81_v12 = vmul.f32 14.0, %v32_v62 }
  0x3c   :  { %v129_v17 = vmax.f32 %v80_v8, 0.0  ;;  %v130_v23 = vmax.f32 %v81_v12, 0.0 }
  0x41   :  { %v33_v3 = vld [vmem:[%s512_s0 + $0xc8] sm:$0xff]  ;;  %v34_v4 = vld [vmem:[%s512_s0 + $0xd0] sm:$0xff] }
  0x42   :  { %170 = vst [vmem:[%s513_s1 + $0x78] sm:$0xff] %v121_v57  ;;  %v82_v13 = vmul.f32 14.0, %v33_v3  ;;  %v83_v14 = vmul.f32 14.0, %v34_v4 }
  0x44   :  { %v131_v24 = vmax.f32 %v82_v13, 0.0  ;;  %v132_v25 = vmax.f32 %v83_v14, 0.0 }
  0x49   :  { %v35_v9 = vld [vmem:[%s512_s0 + $0xd8] sm:$0xff]  ;;  %v36_v10 = vld [vmem:[%s512_s0 + $0xe0] sm:$0xff] }
  0x4a   :  { %171 = vst [vmem:[%s513_s1 + $0x80] sm:$0xff] %v122_v63  ;;  %172 = vst [vmem:[%s513_s1 + $0x88] sm:$0xff] %v123_v0  ;;  %v84_v18 = vmul.f32 14.0, %v35_v9  ;;  %v85_v19 = vmul.f32 14.0, %v36_v10 }
  0x4b   :  { %173 = vst [vmem:[%s513_s1 + $0x90] sm:$0xff] %v124_v1 }
  0x4c   :  { %v133_v29 = vmax.f32 %v84_v18, 0.0  ;;  %v134_v30 = vmax.f32 %v85_v19, 0.0 }
  0x52   :  { %v37_v15 = vld [vmem:[%s512_s0 + $0xe8] sm:$0xff]  ;;  %v38_v16 = vld [vmem:[%s512_s0 + $0xf0] sm:$0xff] }
  0x53   :  { %174 = vst [vmem:[%s513_s1 + $0x98] sm:$0xff] %v125_v5  ;;  %175 = vst [vmem:[%s513_s1 + $0xa0] sm:$0xff] %v126_v6  ;;  %v86_v20 = vmul.f32 14.0, %v37_v15  ;;  %v87_v26 = vmul.f32 14.0, %v38_v16 }
  0x54   :  { %176 = vst [vmem:[%s513_s1 + $0xa8] sm:$0xff] %v127_v7 }
  0x55   :  { %v135_v31 = vmax.f32 %v86_v20, 0.0  ;;  %v136_v35 = vmax.f32 %v87_v26, 0.0 }
  0x5b   :  { %v39_v21 = vld [vmem:[%s512_s0 + $0xf8] sm:$0xff]  ;;  %v40_v22 = vld [vmem:[%s512_s0 + $0x100] sm:$0xff] }
  0x5c   :  { %177 = vst [vmem:[%s513_s1 + $0xb0] sm:$0xff] %v128_v11  ;;  %v88_v32 = vmul.f32 14.0, %v39_v21  ;;  %v89_v36 = vmul.f32 14.0, %v40_v22 }
  0x5e   :  { %v137_v41 = vmax.f32 %v88_v32, 0.0  ;;  %v138_v47 = vmax.f32 %v89_v36, 0.0 }
  0x63   :  { %v41_v27 = vld [vmem:[%s512_s0 + $0x108] sm:$0xff]  ;;  %v42_v28 = vld [vmem:[%s512_s0 + $0x110] sm:$0xff] }
  0x64   :  { %178 = vst [vmem:[%s513_s1 + $0xb8] sm:$0xff] %v129_v17  ;;  %v90_v37 = vmul.f32 14.0, %v41_v27  ;;  %v91_v38 = vmul.f32 14.0, %v42_v28 }
  0x66   :  { %v139_v48 = vmax.f32 %v90_v37, 0.0  ;;  %v140_v49 = vmax.f32 %v91_v38, 0.0 }
  0x6b   :  { %v43_v33 = vld [vmem:[%s512_s0 + $0x118] sm:$0xff]  ;;  %v44_v34 = vld [vmem:[%s512_s0 + $0x120] sm:$0xff] }
  0x6c   :  { %179 = vst [vmem:[%s513_s1 + $0xc0] sm:$0xff] %v130_v23  ;;  %180 = vst [vmem:[%s513_s1 + $0xc8] sm:$0xff] %v131_v24  ;;  %v92_v42 = vmul.f32 14.0, %v43_v33  ;;  %v93_v43 = vmul.f32 14.0, %v44_v34 }
  0x6d   :  { %181 = vst [vmem:[%s513_s1 + $0xd0] sm:$0xff] %v132_v25 }
  0x6e   :  { %v141_v53 = vmax.f32 %v92_v42, 0.0  ;;  %v142_v54 = vmax.f32 %v93_v43, 0.0 }
  0x74   :  { %v45_v39 = vld [vmem:[%s512_s0 + $0x128] sm:$0xff]  ;;  %v46_v40 = vld [vmem:[%s512_s0 + $0x130] sm:$0xff] }
  0x75   :  { %182 = vst [vmem:[%s513_s1 + $0xd8] sm:$0xff] %v133_v29  ;;  %183 = vst [vmem:[%s513_s1 + $0xe0] sm:$0xff] %v134_v30  ;;  %v94_v44 = vmul.f32 14.0, %v45_v39  ;;  %v95_v50 = vmul.f32 14.0, %v46_v40 }
  0x76   :  { %184 = vst [vmem:[%s513_s1 + $0xe8] sm:$0xff] %v135_v31 }
  0x77   :  { %v143_v55 = vmax.f32 %v94_v44, 0.0  ;;  %v144_v59 = vmax.f32 %v95_v50, 0.0 }
  0x7d   :  { %v47_v45 = vld [vmem:[%s512_s0 + $0x138] sm:$0xff]  ;;  %v48_v46 = vld [vmem:[%s512_s0 + $0x140] sm:$0xff] }
  0x7e   :  { %185 = vst [vmem:[%s513_s1 + $0xf0] sm:$0xff] %v136_v35  ;;  %v96_v56 = vmul.f32 14.0, %v47_v45  ;;  %v97_v60 = vmul.f32 14.0, %v48_v46 }
  0x80   :  { %v145_v1 = vmax.f32 %v96_v56, 0.0  ;;  %v146_v7 = vmax.f32 %v97_v60, 0.0 }
  0x85   :  { %v49_v51 = vld [vmem:[%s512_s0 + $0x148] sm:$0xff]  ;;  %v50_v52 = vld [vmem:[%s512_s0 + $0x150] sm:$0xff] }
  0x86   :  { %186 = vst [vmem:[%s513_s1 + $0xf8] sm:$0xff] %v137_v41  ;;  %v98_v61 = vmul.f32 14.0, %v49_v51  ;;  %v99_v62 = vmul.f32 14.0, %v50_v52 }
  0x88   :  { %v147_v8 = vmax.f32 %v98_v61, 0.0  ;;  %v148_v9 = vmax.f32 %v99_v62, 0.0 }
  0x8d   :  { %v51_v57 = vld [vmem:[%s512_s0 + $0x158] sm:$0xff]  ;;  %v52_v58 = vld [vmem:[%s512_s0 + $0x160] sm:$0xff] }
  0x8e   :  { %187 = vst [vmem:[%s513_s1 + $0x100] sm:$0xff] %v138_v47  ;;  %188 = vst [vmem:[%s513_s1 + $0x108] sm:$0xff] %v139_v48  ;;  %v100_v2 = vmul.f32 14.0, %v51_v57  ;;  %v101_v3 = vmul.f32 14.0, %v52_v58 }
  0x8f   :  { %189 = vst [vmem:[%s513_s1 + $0x110] sm:$0xff] %v140_v49 }
  0x90   :  { %v149_v11 = vmax.f32 %v100_v2, 0.0  ;;  %v150_v12 = vmax.f32 %v101_v3, 0.0 }
  0x96   :  { %v53_v63 = vld [vmem:[%s512_s0 + $0x168] sm:$0xff]  ;;  %v54_v0 = vld [vmem:[%s512_s0 + $0x170] sm:$0xff] }
  0x97   :  { %190 = vst [vmem:[%s513_s1 + $0x118] sm:$0xff] %v141_v53  ;;  %191 = vst [vmem:[%s513_s1 + $0x120] sm:$0xff] %v142_v54  ;;  %v102_v4 = vmul.f32 14.0, %v53_v63  ;;  %v103_v10 = vmul.f32 14.0, %v54_v0 }
  0x98   :  { %192 = vst [vmem:[%s513_s1 + $0x128] sm:$0xff] %v143_v55 }
  0x99   :  { %v151_v13 = vmax.f32 %v102_v4, 0.0  ;;  %v152_v15 = vmax.f32 %v103_v10, 0.0 }
  0x9f   :  { %v55_v5 = vld [vmem:[%s512_s0 + $0x178] sm:$0xff]  ;;  %v56_v6 = vld [vmem:[%s512_s0 + $0x180] sm:$0xff] }
  0xa0   :  { %193 = vst [vmem:[%s513_s1 + $0x130] sm:$0xff] %v144_v59  ;;  %194 = vst [vmem:[%s513_s1 + $0x138] sm:$0xff] %v145_v1  ;;  %v104_v14 = vmul.f32 14.0, %v55_v5  ;;  %v105_v16 = vmul.f32 14.0, %v56_v6 }
  0xa1   :  { %195 = vst [vmem:[%s513_s1 + $0x140] sm:$0xff] %v146_v7  ;;  %196 = vst [vmem:[%s513_s1 + $0x148] sm:$0xff] %v147_v8 }
  0xa2   :  { %197 = vst [vmem:[%s513_s1 + $0x150] sm:$0xff] %v148_v9  ;;  %198 = vst [vmem:[%s513_s1 + $0x158] sm:$0xff] %v149_v11  ;;  %v153_v17 = vmax.f32 %v104_v14, 0.0  ;;  %v154_v18 = vmax.f32 %v105_v16, 0.0 }
  0xa3   :  { %199 = vst [vmem:[%s513_s1 + $0x160] sm:$0xff] %v150_v12  ;;  %200 = vst [vmem:[%s513_s1 + $0x168] sm:$0xff] %v151_v13 }
  0xa4   :  { %201 = vst [vmem:[%s513_s1 + $0x170] sm:$0xff] %v152_v15  ;;  %202 = vst [vmem:[%s513_s1 + $0x178] sm:$0xff] %v153_v17 }
  0xa5   :  { %203 = vst [vmem:[%s513_s1 + $0x180] sm:$0xff] %v154_v18 }

</bundles_post_ra>
